<compile_context>
chip_gen: v7x
topology: tpu7x:2x2x1
jax: 0.10.0
libtpu: 0.0.40
codegen_flags: <defaults>
</compile_context>

<pallas_src>
import functools
import math

import jax
import jax.numpy as jnp
from jax import lax
from jax.experimental import pallas as pl
from jax.experimental.pallas import tpu as pltpu  # noqa: F401  (kept for TPU-specific tuning, e.g. CompilerParams at larger shapes)


def _fused_mha_kernel(x_ref, w_ref, pw_ref, c_ref, out_ref, attn_ref, *,
                      n_head, d_k, d_v, mb, len_k,
                      inv_temperature, eps, apply_ln):
    """Fused: one-push QKV projection + head-batched attention + concat heads
    + output projection + literal residual broadcast + LayerNormalization."""
    n_kv = mb * len_k
    hdk = n_head * d_k
    hdv = n_head * d_v

    x = x_ref[...]                                   # (2*mb*len_k + mb, d_model): [k2; v2; q2]
    residual = x[2 * n_kv:2 * n_kv + mb, :]          # raw q rows (also the residual)

    # --- all three projections in ONE MXU push -------------------------------
    # rows: [0:n_kv]=k, [n_kv:2n_kv]=v, [2n_kv:2n_kv+mb]=q ; cols: [Wk | Wv | Wq]
    r = jnp.dot(x, w_ref[...], preferred_element_type=jnp.float32)   # (34, 2*hdk+hdv)
    K = r[0:n_kv, 0:hdk]                                             # (mb*Lk, H*d_k)
    V = r[n_kv:2 * n_kv, hdk:hdk + hdv]                              # (mb*Lk, H*d_v)
    Q = r[2 * n_kv:2 * n_kv + mb, hdk + hdv:hdk + hdv + hdk]         # (mb,    H*d_k)

    K3 = K.reshape(mb, len_k, hdk)   # leading-dim split; layout preserving
    V3 = V.reshape(mb, len_k, hdv)

    # --- head-batched scores via a block-diagonal head mask on Q -------------
    row = lax.broadcasted_iota(jnp.int32, (n_head, hdk), 0)
    col = lax.broadcasted_iota(jnp.int32, (n_head, hdk), 1)
    lo = row * d_k
    headmask = ((col >= lo) & (col < lo + d_k)).astype(jnp.float32)  # (H, H*d_k)
    qm = Q[:, None, :] * headmask[None, :, :]                        # (mb, H, H*d_k)

    s = jnp.einsum('bhd,bkd->bhk', qm, K3,
                   preferred_element_type=jnp.float32) * inv_temperature   # (mb, H, Lk)
    m = jnp.max(s, axis=-1, keepdims=True)
    e = jnp.exp(s - m)
    p = e * pl.reciprocal(jnp.sum(e, axis=-1, keepdims=True), approx=True)  # softmax over keys

    # Lane-dense attention output, written ONCE: (mb, H*Lk), cols = h*Lk + k.
    attn_cat = jnp.concatenate([p[:, h:h + 1, :] for h in range(n_head)], axis=-1)
    attn_ref[...] = attn_cat[:, 0, :]

    # --- head-batched context; pick each head's own d_v block, concat on lanes
    ctx_full = jnp.einsum('bhk,bkd->bhd', p, V3,
                          preferred_element_type=jnp.float32)        # (mb, H, H*d_v)
    ctx = jnp.concatenate([ctx_full[:, h:h + 1, h * d_v:(h + 1) * d_v]
                           for h in range(n_head)], axis=-1)[:, 0, :]  # (mb, H*d_v)

    # --- output projection (nn.Linear), packed small params ------------------
    c = c_ref[...]                                                    # (3, d_model): [proj_b; a_2; b_2]
    proj = jnp.dot(ctx, pw_ref[...], preferred_element_type=jnp.float32) + c[0:1, :]  # (mb, d_model)

    # Literal torch broadcast: (mb, d_model) + (mb, 1, d_model) -> (mb, mb, d_model).
    z = proj[None, :, :] + residual[:, None, :]
    if apply_ln:  # static (mirrors `if z.size(1) == 1: return z`)
        d = z.shape[-1]
        mu = jnp.mean(z, axis=-1, keepdims=True)
        var = jnp.sum((z - mu) ** 2, axis=-1, keepdims=True) / (d - 1.0)   # unbiased std
        inv_sigma = pl.reciprocal(jnp.sqrt(var) + eps, approx=True)        # EUP; eps on sigma
        z = (z - mu) * inv_sigma
        z = z * c[1:2, :][None, :, :] + c[2:3, :][None, :, :]
    out_ref[...] = z


def prepare_params(params):
    """One-time weight layout prep (outside the jitted forward): head-concat on
    lanes, Q/K/V weight fusion on lanes, and packing of the tiny vectors."""
    n_head, d_model, d_k = params["w_qs"].shape
    d_v = params["w_vs"].shape[-1]
    wq = jnp.transpose(params["w_qs"], (1, 0, 2)).reshape(d_model, n_head * d_k)
    wk = jnp.transpose(params["w_ks"], (1, 0, 2)).reshape(d_model, n_head * d_k)
    wv = jnp.transpose(params["w_vs"], (1, 0, 2)).reshape(d_model, n_head * d_v)
    return {
        "w_kvq": jnp.concatenate([wk, wv, wq], axis=1),              # (d_model, 2*H*d_k + H*d_v)
        "proj_w": params["proj_w"],                                  # (H*d_v, d_model), pre-transposed
        "consts": jnp.stack([params["proj_b"], params["a_2"], params["b_2"]], axis=0),  # (3, d_model)
    }


def multi_head_attention_fwd(prepared, q, k, v, *, n_head, d_k, d_v):
    mb, len_q, d_model = q.shape
    _, len_k, _ = k.shape
    assert len_q == 1, "literal `.view(mb_size, -1)` + nn.Linear requires len_q == 1"

    inv_temperature = 1.0 / (float(d_model) ** 0.5)
    apply_ln = (mb != 1)  # z.shape[1] == mb in the literal code

    q2 = q.reshape(mb, d_model)            # len_q == 1 (also serves as the residual)
    k2 = k.reshape(mb * len_k, d_model)
    v2 = v.reshape(mb * len_k, d_model)
    x = jnp.concatenate([k2, v2, q2], axis=0)          # (2*mb*len_k + mb, d_model)

    out, attn2 = pl.pallas_call(
        functools.partial(_fused_mha_kernel,
                          n_head=n_head, d_k=d_k, d_v=d_v, mb=mb, len_k=len_k,
                          inv_temperature=inv_temperature, eps=1e-3,
                          apply_ln=apply_ln),
        # No grid: whole-array blocks, everything resident in VMEM (~25 KB f32).
        out_shape=(
            jax.ShapeDtypeStruct((mb, mb, d_model), jnp.float32),
            jax.ShapeDtypeStruct((mb, n_head * len_k), jnp.float32),
        ),
    )(x, prepared["w_kvq"], prepared["proj_w"], prepared["consts"])

    # Restore torch ordering (n_head*mb, len_q, len_k) with head-major batch.
    attns = jnp.transpose(attn2.reshape(mb, n_head, len_k), (1, 0, 2))
    attns = attns.reshape(n_head * mb, len_q, len_k)
    return out, attns


def _reference(params, q, k, v):
    """Pure-JAX mirror of the torch forward (softmax over keys; eval dropout)."""
    n_head, d_model, d_k = params["w_qs"].shape
    d_v = params["w_vs"].shape[-1]
    mb, len_q, _ = q.shape
    _, len_k, _ = k.shape
    q_s = jnp.einsum('bqm,hmd->hbqd', q, params["w_qs"]).reshape(n_head * mb, len_q, d_k)
    k_s = jnp.einsum('bkm,hmd->hbkd', k, params["w_ks"]).reshape(n_head * mb, len_k, d_k)
    v_s = jnp.einsum('bkm,hmd->hbkd', v, params["w_vs"]).reshape(n_head * mb, len_k, d_v)
    attn = jnp.einsum('nqd,nkd->nqk', q_s, k_s) / (float(d_model) ** 0.5)
    attn = jax.nn.softmax(attn, axis=-1)
    outs = jnp.einsum('nqk,nkd->nqd', attn, v_s)
    outs = jnp.concatenate(jnp.split(outs, n_head, axis=0), axis=-1)      # (mb, 1, H*d_v)
    outs = outs.reshape(mb, -1) @ params["proj_w"] + params["proj_b"]
    z = outs[None, :, :] + q[:, 0, :][:, None, :]                         # (mb, mb, d_model)
    if mb != 1:
        mu = jnp.mean(z, axis=-1, keepdims=True)
        sigma = jnp.std(z, axis=-1, keepdims=True, ddof=1)
        z = (z - mu) / (sigma + 1e-3)
        z = z * params["a_2"] + params["b_2"]
    return z, attn


if __name__ == "__main__":
    n_head, d_model, d_k, d_v = 4, 32, 8, 8
    mb, len_q, len_k = 2, 1, 8

    key = jax.random.PRNGKey(0)
    k0, k1, k2, k3, k4, k5, k6 = jax.random.split(key, 7)

    std_qk = (2.0 / (d_model + d_k)) ** 0.5   # xavier_normal
    std_v = (2.0 / (d_model + d_v)) ** 0.5
    params = {
        "w_qs": std_qk * jax.random.normal(k0, (n_head, d_model, d_k), jnp.float32),
        "w_ks": std_qk * jax.random.normal(k1, (n_head, d_model, d_k), jnp.float32),
        "w_vs": std_v * jax.random.normal(k2, (n_head, d_model, d_v), jnp.float32),
        # nn.Linear(n_head*d_v, d_model): stored pre-transposed as (in, out)
        "proj_w": (1.0 / math.sqrt(n_head * d_v)) *
                  jax.random.normal(k3, (n_head * d_v, d_model), jnp.float32),
        "proj_b": jnp.zeros((d_model,), jnp.float32),
        "a_2": jnp.ones((d_model,), jnp.float32),    # LayerNormalization gain
        "b_2": jnp.zeros((d_model,), jnp.float32),   # LayerNormalization bias
    }

    q = jax.random.normal(k4, (mb, len_q, d_model), jnp.float32)
    k_in = jax.random.normal(k5, (mb, len_k, d_model), jnp.float32)
    v_in = jax.random.normal(k6, (mb, len_k, d_model), jnp.float32)

    prepared = prepare_params(params)   # weight prep hoisted out of the jitted forward

    fwd = jax.jit(functools.partial(multi_head_attention_fwd,
                                    n_head=n_head, d_k=d_k, d_v=d_v))
    out, attns = fwd(prepared, q, k_in, v_in)
    jax.block_until_ready((out, attns))

    assert out.shape == (mb, mb, d_model)
    assert attns.shape == (n_head * mb, len_q, len_k)

    ref_out, ref_attn = _reference(params, q, k_in, v_in)
    assert bool(jnp.allclose(out, ref_out, rtol=1e-2, atol=1e-2)), "output mismatch vs reference"
    assert bool(jnp.allclose(attns, ref_attn, rtol=1e-2, atol=1e-2)), "attn mismatch vs reference"

    print("KERNEL_OK")
</pallas_src>

<mosaic_0001>
module attributes {stable_mosaic.version = 11 : i64} {
  func.func @_fused_mha_kernel(%arg0: memref<34x32xf32, #tpu.memory_space<vmem>>, %arg1: memref<32x96xf32, #tpu.memory_space<vmem>>, %arg2: memref<32x32xf32, #tpu.memory_space<vmem>>, %arg3: memref<3x32xf32, #tpu.memory_space<vmem>>, %arg4: memref<2x2x32xf32, #tpu.memory_space<vmem>>, %arg5: memref<2x32xf32, #tpu.memory_space<vmem>>) attributes {dimension_semantics = [], scalar_prefetch = 0 : i64, scratch_operands = 0 : i64, tpu.core_type = #tpu.core_type<tc>} {
    %c0 = arith.constant 0 : index
    %c0_0 = arith.constant 0 : index
    %0 = vector.load %arg0[%c0, %c0_0] : memref<34x32xf32, #tpu.memory_space<vmem>>, vector<34x32xf32>
    %1 = vector.extract_strided_slice %0 {offsets = [32, 0], sizes = [2, 32], strides = [1, 1]} : vector<34x32xf32> to vector<2x32xf32>
    %c0_1 = arith.constant 0 : index
    %c0_2 = arith.constant 0 : index
    %2 = vector.load %arg1[%c0_1, %c0_2] : memref<32x96xf32, #tpu.memory_space<vmem>>, vector<32x96xf32>
    %cst = arith.constant dense<0.000000e+00> : vector<34x96xf32>
    %3 = tpu.matmul %0, %2, %cst {dimension_numbers = #tpu.dot_dimension_numbers<[1], [0], [0], [1], [0, 0, 1, 1], [], []>} : vector<34x32xf32>, vector<32x96xf32>, vector<34x96xf32> -> vector<34x96xf32>
    %4 = vector.extract_strided_slice %3 {offsets = [0, 0], sizes = [16, 32], strides = [1, 1]} : vector<34x96xf32> to vector<16x32xf32>
    %5 = vector.extract_strided_slice %3 {offsets = [16, 32], sizes = [16, 32], strides = [1, 1]} : vector<34x96xf32> to vector<16x32xf32>
    %6 = vector.extract_strided_slice %3 {offsets = [32, 64], sizes = [2, 32], strides = [1, 1]} : vector<34x96xf32> to vector<2x32xf32>
    %7 = vector.shape_cast %4 : vector<16x32xf32> to vector<2x8x32xf32>
    %8 = vector.shape_cast %5 : vector<16x32xf32> to vector<2x8x32xf32>
    %9 = tpu.iota {dimensions = array<i32: 0>} : vector<4x32xi32>
    %10 = tpu.iota {dimensions = array<i32: 1>} : vector<4x32xi32>
    %c8_i32 = arith.constant 8 : i32
    %11 = vector.broadcast %c8_i32 : i32 to vector<4x32xi32>
    %12 = arith.muli %9, %11 : vector<4x32xi32>
    %13 = arith.cmpi sge, %10, %12 : vector<4x32xi32>
    %c8_i32_3 = arith.constant 8 : i32
    %14 = vector.broadcast %c8_i32_3 : i32 to vector<4x32xi32>
    %15 = arith.addi %12, %14 : vector<4x32xi32>
    %16 = arith.cmpi slt, %10, %15 : vector<4x32xi32>
    %17 = arith.andi %13, %16 : vector<4x32xi1>
    %18 = arith.extui %17 : vector<4x32xi1> to vector<4x32xi32>
    %19 = arith.sitofp %18 : vector<4x32xi32> to vector<4x32xf32>
    %20 = vector.shape_cast %6 : vector<2x32xf32> to vector<2x1x32xf32>
    %21 = vector.shape_cast %19 : vector<4x32xf32> to vector<1x4x32xf32>
    %22 = vector.broadcast %20 : vector<2x1x32xf32> to vector<2x4x32xf32>
    %23 = vector.broadcast %21 : vector<1x4x32xf32> to vector<2x4x32xf32>
    %24 = arith.mulf %22, %23 : vector<2x4x32xf32>
    "tpu.trace_start"() <{level = 10 : i32, message = "bhd,bkd->bhk"}> : () -> ()
    %cst_4 = arith.constant dense<0.000000e+00> : vector<2x4x8xf32>
    %25 = tpu.matmul %24, %7, %cst_4 {dimension_numbers = #tpu.dot_dimension_numbers<[2], [2], [1], [1], [0, 0, 0, 1, 1, 1], [0], [0]>} : vector<2x4x32xf32>, vector<2x8x32xf32>, vector<2x4x8xf32> -> vector<2x4x8xf32>
    "tpu.trace_stop"() : () -> ()
    %cst_5 = arith.constant 0.176776692 : f32
    %26 = vector.broadcast %cst_5 : f32 to vector<2x4x8xf32>
    %27 = arith.mulf %25, %26 : vector<2x4x8xf32>
    %cst_6 = arith.constant dense<0xFF800000> : vector<2x4xf32>
    %28 = vector.multi_reduction <maximumf>, %27, %cst_6 [2] : vector<2x4x8xf32> to vector<2x4xf32>
    %29 = vector.shape_cast %28 : vector<2x4xf32> to vector<2x4x1xf32>
    %30 = vector.broadcast %29 : vector<2x4x1xf32> to vector<2x4x8xf32>
    %31 = arith.subf %27, %30 : vector<2x4x8xf32>
    %32 = math.exp %31 : vector<2x4x8xf32>
    %cst_7 = arith.constant dense<0.000000e+00> : vector<2x4xf32>
    %33 = vector.multi_reduction <add>, %32, %cst_7 [2] : vector<2x4x8xf32> to vector<2x4xf32>
    %34 = vector.shape_cast %33 : vector<2x4xf32> to vector<2x4x1xf32>
    %35 = tpu.reciprocal %34 {approx = true} : vector<2x4x1xf32> -> vector<2x4x1xf32>
    %36 = vector.broadcast %35 : vector<2x4x1xf32> to vector<2x4x8xf32>
    %37 = arith.mulf %32, %36 : vector<2x4x8xf32>
    %38 = vector.extract_strided_slice %37 {offsets = [0, 0, 0], sizes = [2, 1, 8], strides = [1, 1, 1]} : vector<2x4x8xf32> to vector<2x1x8xf32>
    %39 = vector.extract_strided_slice %37 {offsets = [0, 1, 0], sizes = [2, 1, 8], strides = [1, 1, 1]} : vector<2x4x8xf32> to vector<2x1x8xf32>
    %40 = vector.extract_strided_slice %37 {offsets = [0, 2, 0], sizes = [2, 1, 8], strides = [1, 1, 1]} : vector<2x4x8xf32> to vector<2x1x8xf32>
    %41 = vector.extract_strided_slice %37 {offsets = [0, 3, 0], sizes = [2, 1, 8], strides = [1, 1, 1]} : vector<2x4x8xf32> to vector<2x1x8xf32>
    %42 = tpu.concatenate %38, %39, %40, %41 in 2 : vector<2x1x8xf32>, vector<2x1x8xf32>, vector<2x1x8xf32>, vector<2x1x8xf32> -> vector<2x1x32xf32>
    %43 = vector.shape_cast %42 : vector<2x1x32xf32> to vector<2x32xf32>
    %c0_8 = arith.constant 0 : index
    %c0_9 = arith.constant 0 : index
    %44 = vector.load %arg5[%c0_8, %c0_9] : memref<2x32xf32, #tpu.memory_space<vmem>>, vector<2x32xf32>
    tpu.vector_store %arg5[%c0_8, %c0_9], %43 {strides = array<i32>} : memref<2x32xf32, #tpu.memory_space<vmem>>, vector<2x32xf32>,
    "tpu.trace_start"() <{level = 10 : i32, message = "bhk,bkd->bhd"}> : () -> ()
    %cst_10 = arith.constant dense<0.000000e+00> : vector<2x4x32xf32>
    %45 = tpu.matmul %37, %8, %cst_10 {dimension_numbers = #tpu.dot_dimension_numbers<[2], [1], [1], [2], [0, 0, 0, 1, 1, 2], [0], [0]>} : vector<2x4x8xf32>, vector<2x8x32xf32>, vector<2x4x32xf32> -> vector<2x4x32xf32>
    "tpu.trace_stop"() : () -> ()
    %46 = vector.extract_strided_slice %45 {offsets = [0, 0, 0], sizes = [2, 1, 8], strides = [1, 1, 1]} : vector<2x4x32xf32> to vector<2x1x8xf32>
    %47 = vector.extract_strided_slice %45 {offsets = [0, 1, 8], sizes = [2, 1, 8], strides = [1, 1, 1]} : vector<2x4x32xf32> to vector<2x1x8xf32>
    %48 = vector.extract_strided_slice %45 {offsets = [0, 2, 16], sizes = [2, 1, 8], strides = [1, 1, 1]} : vector<2x4x32xf32> to vector<2x1x8xf32>
    %49 = vector.extract_strided_slice %45 {offsets = [0, 3, 24], sizes = [2, 1, 8], strides = [1, 1, 1]} : vector<2x4x32xf32> to vector<2x1x8xf32>
    %50 = tpu.concatenate %46, %47, %48, %49 in 2 : vector<2x1x8xf32>, vector<2x1x8xf32>, vector<2x1x8xf32>, vector<2x1x8xf32> -> vector<2x1x32xf32>
    %51 = vector.shape_cast %50 : vector<2x1x32xf32> to vector<2x32xf32>
    %c0_11 = arith.constant 0 : index
    %c0_12 = arith.constant 0 : index
    %52 = vector.load %arg3[%c0_11, %c0_12] : memref<3x32xf32, #tpu.memory_space<vmem>>, vector<3x32xf32>
    %c0_13 = arith.constant 0 : index
    %c0_14 = arith.constant 0 : index
    %53 = vector.load %arg2[%c0_13, %c0_14] : memref<32x32xf32, #tpu.memory_space<vmem>>, vector<32x32xf32>
    %cst_15 = arith.constant dense<0.000000e+00> : vector<2x32xf32>
    %54 = tpu.matmul %51, %53, %cst_15 {dimension_numbers = #tpu.dot_dimension_numbers<[1], [0], [0], [1], [0, 0, 1, 1], [], []>} : vector<2x32xf32>, vector<32x32xf32>, vector<2x32xf32> -> vector<2x32xf32>
    %55 = vector.extract_strided_slice %52 {offsets = [0, 0], sizes = [1, 32], strides = [1, 1]} : vector<3x32xf32> to vector<1x32xf32>
    %56 = vector.broadcast %55 : vector<1x32xf32> to vector<2x32xf32>
    %57 = arith.addf %54, %56 : vector<2x32xf32>
    %58 = vector.shape_cast %57 : vector<2x32xf32> to vector<1x2x32xf32>
    %59 = vector.shape_cast %1 : vector<2x32xf32> to vector<2x1x32xf32>
    %60 = vector.broadcast %58 : vector<1x2x32xf32> to vector<2x2x32xf32>
    %61 = vector.broadcast %59 : vector<2x1x32xf32> to vector<2x2x32xf32>
    %62 = arith.addf %60, %61 : vector<2x2x32xf32>
    %cst_16 = arith.constant dense<0.000000e+00> : vector<2x2xf32>
    %63 = vector.multi_reduction <add>, %62, %cst_16 [2] : vector<2x2x32xf32> to vector<2x2xf32>
    %64 = vector.shape_cast %63 : vector<2x2xf32> to vector<2x2x1xf32>
    %cst_17 = arith.constant 3.200000e+01 : f32
    %65 = vector.broadcast %cst_17 : f32 to vector<2x2x1xf32>
    %66 = arith.divf %64, %65 : vector<2x2x1xf32>
    %67 = vector.broadcast %66 : vector<2x2x1xf32> to vector<2x2x32xf32>
    %68 = arith.subf %62, %67 : vector<2x2x32xf32>
    %69 = arith.mulf %68, %68 : vector<2x2x32xf32>
    %cst_18 = arith.constant dense<0.000000e+00> : vector<2x2xf32>
    %70 = vector.multi_reduction <add>, %69, %cst_18 [2] : vector<2x2x32xf32> to vector<2x2xf32>
    %71 = vector.shape_cast %70 : vector<2x2xf32> to vector<2x2x1xf32>
    %cst_19 = arith.constant 3.100000e+01 : f32
    %72 = vector.broadcast %cst_19 : f32 to vector<2x2x1xf32>
    %73 = arith.divf %71, %72 : vector<2x2x1xf32>
    %74 = math.sqrt %73 : vector<2x2x1xf32>
    %cst_20 = arith.constant 1.000000e-03 : f32
    %75 = vector.broadcast %cst_20 : f32 to vector<2x2x1xf32>
    %76 = arith.addf %74, %75 : vector<2x2x1xf32>
    %77 = tpu.reciprocal %76 {approx = true} : vector<2x2x1xf32> -> vector<2x2x1xf32>
    %78 = vector.broadcast %66 : vector<2x2x1xf32> to vector<2x2x32xf32>
    %79 = arith.subf %62, %78 : vector<2x2x32xf32>
    %80 = vector.broadcast %77 : vector<2x2x1xf32> to vector<2x2x32xf32>
    %81 = arith.mulf %79, %80 : vector<2x2x32xf32>
    %82 = vector.extract_strided_slice %52 {offsets = [1, 0], sizes = [1, 32], strides = [1, 1]} : vector<3x32xf32> to vector<1x32xf32>
    %83 = vector.shape_cast %82 : vector<1x32xf32> to vector<1x1x32xf32>
    %84 = vector.broadcast %83 : vector<1x1x32xf32> to vector<2x2x32xf32>
    %85 = arith.mulf %81, %84 : vector<2x2x32xf32>
    %86 = vector.extract_strided_slice %52 {offsets = [2, 0], sizes = [1, 32], strides = [1, 1]} : vector<3x32xf32> to vector<1x32xf32>
    %87 = vector.shape_cast %86 : vector<1x32xf32> to vector<1x1x32xf32>
    %88 = vector.broadcast %87 : vector<1x1x32xf32> to vector<2x2x32xf32>
    %89 = arith.addf %85, %88 : vector<2x2x32xf32>
    %c0_21 = arith.constant 0 : index
    %c0_22 = arith.constant 0 : index
    %c0_23 = arith.constant 0 : index
    %90 = vector.load %arg4[%c0_21, %c0_22, %c0_23] : memref<2x2x32xf32, #tpu.memory_space<vmem>>, vector<2x2x32xf32>
    tpu.vector_store %arg4[%c0_21, %c0_22, %c0_23], %89 {strides = array<i32>} : memref<2x2x32xf32, #tpu.memory_space<vmem>>, vector<2x2x32xf32>,
    return
  }
}

</mosaic_0001>

<bundles_post_ra>
// kernel: multi_head_attention_fwd.1
= control target key start
LH: loop header
LB: loop body
LE: loop exit
PB: predicated region body
PF: predicated region fallthrough
CT: control target
= control target key end

     0   :  { %v135_v3 = vlaneseq  ;;  %v929_v4 = vmov 0.0|0.0   ;;  %vm930_vm0 = vmmov 0   ;;  %v931_v7 = vmov 0.0   ;;  %s1152_s0 = inlined_call_operand.vmem [shape: f32[34,32], index: 0, kind: input, shape index: {}]   ;;  %s1153_s1 = inlined_call_operand.vmem [shape: f32[32,96], index: 1, kind: input, shape index: {}]   ;;  %s1154_s2 = inlined_call_operand.vmem [shape: f32[32,32], index: 2, kind: input, shape index: {}]   ;;  %s1155_s3 = inlined_call_operand.vmem [shape: f32[3,32], index: 3, kind: input, shape index: {}]   ;;  %s1156_s4 = inlined_call_operand.hbm [shape: f32[2,2,32], index: 4, kind: output, shape index: {0}]   ;;  %s1157_s5 = inlined_call_operand.vmem [shape: f32[2,32], index: 5, kind: output, shape index: {1}]  }
   0x1   :  { %v25_v0 = vld [vmem:[%s1153_s1] sm:$0xff]  ;;  %v26_v1 = vld [vmem:[%s1153_s1 + $0x8] sm:$0xff]  ;;  %v27_v2 = vld [vmem:[%s1153_s1 + $0x10] sm:$0xff]  ;;  %865 = vmatprep.subr.bf16.mxu0 %v929_v4  ;;  %819 = vmatprep.mubr.msk.f32.mxu0 %vm930_vm0, %v931_v7 }
   0x2   :  { %v866_v5 = vpack.c.bf16 %v26_v1, %v25_v0  ;;  %v28_v6 = vld [vmem:[%s1153_s1 + $0x18] sm:$0xff]  ;;  %v986_v8 = vshrl.u32 %v135_v3, 7  ;;  %v138_v9 = vand.u32 127, %v135_v3  ;;  %834 = vmatprep.subr.mxu1 %v931_v7  ;;  %836 = vmatprep.mubr.msk.f32.mxu1 %vm930_vm0, %v931_v7 }
   0x3   :  { %v869_v10 = vpack.c.bf16 %v28_v6, %v27_v2 }
   0x4   :  { %867 = vmatpush3.bf16.msra.mxu0 %v866_v5 }
   0x5   :  { %11 = vsyncpa [#allocation3], 0  ;;  %868 = vmatprep.subr.bf16.mxu0 %v929_v4  ;;  %v139_v11 = vmul.u32 8, %v986_v8  ;;  %v20_v13 = vld [vmem:[%s1152_s0] sm:$0xff]  ;;  %vm29_vm2 = vcmask 261120   ;;  %v21_v15 = vld [vmem:[%s1152_s0 + $0x8] sm:$0xff] }
   0x6   :  { %s932_s29 = smov 64   ;;  %v22_v16 = vld [vmem:[%s1152_s0 + $0x10] sm:$0xff]  ;;  %v23_v17 = vld [vmem:[%s1152_s0 + $0x18] sm:$0xff]  ;;  %v1022_v18 = vld [vmem:[%s1152_s0 + $0x20] sm:$0x3]  ;;  %v1033_v34 = vsub.s32 0, %v986_v8 }
   0x7   :  { %vm140_vm1 = vcmp.ge.s32.totalorder %v138_v9, %v139_v11  ;;  %v141_v12 = vadd.s32 8, %v139_v11  ;;  %v933_v22 = vmov 1966171168   ;;  %vm343_vm5 = vcmask 60416   ;;  %s934_s0 = smov 96   ;;  %v583_v11 = vld [vmem:[%s1154_s2 + $0x8] sm:$0xff] }
   0x8   :  { %870 = vmatpush3.bf16.msra.mxu0 %v869_v10  ;;  %v148_v23 = vunpack.c.l.s4 %v933_v22  ;;  %vm392_vm6 = vcmask 64512   ;;  %v582_v10 = vld [vmem:[%s1154_s2] sm:$0xff]  ;;  %vm395_vm7 = vcmask 130048   ;;  %vm398_vm8 = vcmask 195584   ;;  %s936_s20 = smov 8   ;;  %s937_s21 = smov 24  }
   0x9   :  { %vm142_vm3 = vcmp.lt.s32.totalorder %v138_v9, %v141_v12  ;;  %v872_v12 = vpack.c.bf16 %v583_v11, %v582_v10  ;;  %vm404_vm9 = vcmask 1041409   ;;  %vm407_vm10 = vcmask 254976  }
   0xa   :  { %vm143_vm4 = vmand %vm140_vm1, %vm142_vm3  ;;  %v149_v26 = vunpack.c.0.s8 %v148_v23 }
   0xb   :  { %820 = vmatmul.mubr.msk.f32.vlgmr.msra.gmra.mrb[0].mxu0 %vm29_vm2, %v20_v13  ;;  %v781_v14 = vsel %vm143_vm4, 1.0, %v931_v7  ;;  %v584_v13 = vld [vmem:[%s1154_s2 + $0x10] sm:$0xff] }
   0xc   :  { %822 = vmatprep.mubr.msk.f32.mxu0 %vm930_vm0, %v931_v7  ;;  %180 = vrot.lane.b32.xlu0 %v781_v14, %s932_s29  ;;  %v1029_v29 = vsub.s32 %v149_v26, %v986_v8 }
   0xf   :  { %823 = vmatmul.mubr.msk.f32.gmra.mrb[2].mxu0 %vm29_vm2, %v21_v15 }
  0x10   :  { %825 = vmatprep.mubr.msk.f32.mxu0 %vm930_vm0, %v931_v7 }
  0x13   :  { %826 = vmatmul.mubr.msk.f32.gmra.mrb[4].mxu0 %vm29_vm2, %v22_v16 }
  0x14   :  { %828 = vmatprep.mubr.msk.f32.mxu0 %vm930_vm0, %v931_v7 }
  0x17   :  { %829 = vmatmul.mubr.msk.f32.gmra.mrb[6].mxu0 %vm29_vm2, %v23_v17 }
  0x18   :  { %831 = vmatprep.mubr.msk.f32.mxu0 %vm930_vm0, %v931_v7 }
  0x1b   :  { %832 = vmatmul.mubr.msk.f32.gmra.mrb[8].mxu0 %vm29_vm2, %v1022_v18 }
  0x7e   :  { %v181_v37 = vpop.permute.xlu0 %180 }
  0xde   :  { %v111_v19 = vpop.f32.mrb[0].mxu0 }
  0xdf   :  { %v821_v20 = vpop.f32.mrb[1].mxu0  ;;  %835 = vmatpush3.xpose.msk.msra.mxu1 %vm29_vm2, %v111_v19 }
  0xe0   :  { %839 = vmatprep.subr.mxu1 %v931_v7 }
  0xe2   :  { %v116_v21 = vpop.f32.mrb[2].mxu0 }
  0xe3   :  { %v824_v24 = vpop.f32.mrb[3].mxu0 }
  0xe6   :  { %v121_v25 = vpop.f32.mrb[4].mxu0 }
  0xe7   :  { %v827_v27 = vpop.f32.mrb[5].mxu0 }
  0xea   :  { %v126_v28 = vpop.f32.mrb[6].mxu0 }
  0xeb   :  { %v830_v30 = vpop.f32.mrb[7].mxu0 }
  0xee   :  { %v131_v31 = vpop.f32.mrb[8].mxu0 }
  0xef   :  { %v153_v32 = vrot.slane %v131_v31, %v1029_v29  ;;  %v833_v33 = vpop.f32.mrb[9].mxu0 }
  0xf1   :  { %v154_v35 = vcombine.high %v153_v32, %v153_v32  ;;  %v161_v36 = vrot.slane %v153_v32, %v1029_v29 }
  0xf3   :  { %v168_v38 = vrot.slane %v154_v35, %v1029_v29  ;;  %v172_v39 = vrot.slane %v161_v36, %v1033_v34  ;;  %v672_v35 = vrot.slane %v1022_v18, %v1029_v29 }
  0xf5   :  { %v183_v40 = vmul.f32 %v181_v37, %v172_v39  ;;  %v176_v41 = vrot.slane %v168_v38, %v1033_v34  ;;  %v673_v36 = vcombine.high %v672_v35, %v672_v35  ;;  %v680_v39 = vrot.slane %v672_v35, %v1029_v29 }
  0xf7   :  { %186 = vrot.lane.b32.xlu0 %v183_v40, %s932_s29  ;;  %v184_v42 = vmul.f32 %v181_v37, %v176_v41  ;;  %v1093_v37 = vld [vmem:[%s1155_s3] sm:$0x7]  ;;  %v687_v38 = vrot.slane %v673_v36, %v1029_v29  ;;  %s935_s3 = smov 16  }
  0xf8   :  { %v589_v40 = vrot.slane %v1093_v37, %v1033_v34 }
  0xf9   :  { %264 = vrot.lane.b32.xlu1 %v184_v42, %s932_s29  ;;  %v695_v41 = vrot.slane %v687_v38, %v1033_v34  ;;  %v691_v42 = vrot.slane %v680_v39, %v1033_v34 }
 0x169   :  { %v187_v43 = vpop.permute.xlu0 %186 }
 0x16a   :  { %837 = vmatmul.mubr.msk.f32.vlgmr.msra.gmra.mrb[0].mxu1 %vm29_vm2, %v187_v43 }
 0x16b   :  { %840 = vmatpush3.xpose.msk.msra.mxu1 %vm29_vm2, %v116_v21  ;;  %841 = vmatprep.mubr.msk.f32.mxu1 %vm930_vm0, %v931_v7  ;;  %v265_v44 = vpop.permute.xlu1 %264 }
 0x16c   :  { %844 = vmatprep.subr.mxu1 %v931_v7 }
 0x16e   :  { %842 = vmatmul.mubr.msk.f32.vlgmr.msra.gmra.mrb[2].mxu1 %vm29_vm2, %v265_v44 }
 0x16f   :  { %846 = vmatprep.mubr.msk.f32.mxu1 %vm930_vm0, %v931_v7 }
 0x23d   :  { %v259_v45 = vpop.f32.mrb[0].mxu1 }
 0x23e   :  { %v341_v46 = vmul.f32 0.17677669, %v259_v45  ;;  %v838_v47 = vpop.f32.mrb[1].mxu1 }
 0x240   :  { %v344_v48 = vsel %vm343_vm5, %v341_v46, -inf }
 0x241   :  { %345 = vmax.xlane.f32.xlu1 %v344_v48  ;;  %v337_v49 = vpop.f32.mrb[2].mxu1 }
 0x242   :  { %v342_v50 = vmul.f32 0.17677669, %v337_v49  ;;  %v843_v51 = vpop.f32.mrb[3].mxu1 }
 0x244   :  { %v347_v52 = vsel %vm343_vm5, %v342_v50, -inf }
 0x245   :  { %348 = vmax.xlane.f32.xlu0 %v347_v52 }
 0x2ce   :  { %v346_v53 = vpop.xlane.xlu1 %345 }
 0x2cf   :  { %v350_v54 = vsub.f32 %v341_v46, %v346_v53 }
 0x2d1   :  { %v352_v55 = vmul.f32 1.442695, %v350_v54 }
 0x2d2   :  { %v349_v56 = vpop.xlane.xlu0 %348 }
 0x2d3   :  { %889 = vpow2.f32 %v352_v55  ;;  %v351_v57 = vsub.f32 %v342_v50, %v349_v56 }
 0x2d5   :  { %v354_v58 = vmul.f32 1.442695, %v351_v57 }
 0x2d7   :  { %891 = vpow2.f32 %v354_v58 }
 0x2dd   :  { %v890_v59 = vpop.eup %889 }
 0x2de   :  { %v356_v60 = vsel %vm343_vm5, %v890_v59, 0.0 }
 0x2df   :  { %357 = vadd.xlane.f32.xlu0 %v356_v60 }
 0x2e1   :  { %v892_v61 = vpop.eup %891 }
 0x2e2   :  { %v359_v62 = vsel %vm343_vm5, %v892_v61, 0.0 }
 0x2e3   :  { %360 = vadd.xlane.f32.xlu1 %v359_v62 }
 0x2f4   :  { %486 = vrot.lane.b32.xlu1 %v126_v28, %s934_s0 }
 0x2f5   :  { %410 = vrot.lane.b32.xlu0 %v121_v25, %s934_s0 }
 0x36c   :  { %v358_v63 = vpop.xlane.xlu0 %357 }
 0x36d   :  { %893 = vrcp.f32 %v358_v63 }
 0x370   :  { %v411_v0 = vpop.permute.xlu0 %410  ;;  %v361_v1 = vpop.xlane.xlu1 %360 }
 0x371   :  { %895 = vrcp.f32 %v361_v1  ;;  %845 = vmatpush3.msra.mxu1 %v411_v0 }
 0x372   :  { %849 = vmatprep.subr.mxu1 %v931_v7 }
 0x374   :  { %v487_v5 = vpop.permute.xlu1 %486 }
 0x377   :  { %v894_v2 = vpop.eup %893 }
 0x378   :  { %v1054_v3 = vmul.f32 %v894_v2, %v890_v59 }
 0x37a   :  { %847 = vmatmul.mubr.msk.f32.vlgmr.msra.gmra.mrb[4].mxu1 %vm392_vm6, %v1054_v3  ;;  %v368_v58 = vrot.slane %v1054_v3, 1  ;;  %v376_v60 = vrot.slane %v1054_v3, 2  ;;  %v384_v62 = vrot.slane %v1054_v3, 3 }
 0x37b   :  { %v896_v6 = vpop.eup %895  ;;  %850 = vmatpush3.msra.mxu1 %v487_v5  ;;  %851 = vmatprep.mubr.msk.f32.mxu1 %vm930_vm0, %v931_v7 }
 0x37c   :  { %v1060_v9 = vmul.f32 %v896_v6, %v892_v61  ;;  %871 = vmatprep.subr.bf16.mxu1 %v929_v4 }
 0x37e   :  { %852 = vmatmul.mubr.msk.f32.vlgmr.msra.gmra.mrb[6].mxu1 %vm392_vm6, %v1060_v9  ;;  %v377_v57 = vrot.slane %v1060_v9, 2  ;;  %v369_v59 = vrot.slane %v1060_v9, 1  ;;  %v385_v61 = vrot.slane %v1060_v9, 3 }
 0x37f   :  { %862 = vmatprep.mubr.msk.f32.mxu1 %vm930_vm0, %v931_v7  ;;  %873 = vmatpush3.bf16.msra.mxu1 %v872_v12  ;;  %v585_v7 = vld [vmem:[%s1154_s2 + $0x18] sm:$0xff] }
 0x380   :  { %874 = vmatprep.subr.bf16.mxu1 %v929_v4  ;;  %v875_v14 = vpack.c.bf16 %v585_v7, %v584_v13 }
 0x383   :  { %876 = vmatpush3.bf16.msra.mxu1 %v875_v14 }
 0x44d   :  { %v481_v15 = vpop.f32.mrb[4].mxu1 }
 0x44e   :  { %v563_v16 = vrot.slane %v481_v15, 1  ;;  %v848_v17 = vpop.f32.mrb[5].mxu1  ;;  %v567_v19 = vrot.slane %v481_v15, 2  ;;  %v571_v28 = vrot.slane %v481_v15, 3 }
 0x450   :  { %v575_v21 = vsel %vm392_vm6, %v481_v15, %v563_v16 }
 0x451   :  { %v557_v20 = vpop.f32.mrb[6].mxu1  ;;  %v577_v26 = vsel %vm395_vm7, %v575_v21, %v567_v19 }
 0x452   :  { %v564_v22 = vrot.slane %v557_v20, 1  ;;  %v568_v4 = vrot.slane %v557_v20, 2  ;;  %v853_v23 = vpop.f32.mrb[7].mxu1  ;;  %v572_v24 = vrot.slane %v557_v20, 3  ;;  %v579_v32 = vsel %vm398_vm8, %v577_v26, %v571_v28 }
 0x454   :  { %v576_v25 = vsel %vm392_vm6, %v557_v20, %v564_v22 }
 0x455   :  { %v578_v27 = vsel %vm395_vm7, %v576_v25, %v568_v4 }
 0x456   :  { %v580_v30 = vsel %vm398_vm8, %v578_v27, %v572_v24 }
 0x457   :  { %v592_v31 = vrot.slane %v580_v30, 7 }
 0x459   :  { %v593_v33 = vsel %vm404_vm9, %v592_v31, %v579_v32  ;;  %v744_v32 = vsub.s32 1, %v986_v8 }
 0x45a   :  { %863 = vmatmul.mubr.msk.f32.vlgmr.msra.gmra.mrb[8].mxu1 %vm29_vm2, %v593_v33  ;;  %v750_v33 = vsub.s32 2, %v986_v8 }
 0x45b   :  { %v745_v35 = vrot.slane %v1093_v37, %v744_v32 }
 0x45c   :  { %v751_v39 = vrot.slane %v1093_v37, %v750_v33 }
 0x52d   :  { %v662_v43 = vpop.f32.mrb[8].mxu1 }
 0x52e   :  { %v663_v44 = vadd.f32 %v662_v43, %v589_v40  ;;  %v864_v18 = vpop.f32.mrb[9].mxu1 }
 0x530   :  { %v699_v45 = vadd.f32 %v695_v41, %v663_v44  ;;  %v698_v46 = vadd.f32 %v691_v42, %v663_v44 }
 0x532   :  { %v703_v47 = vsel %vm407_vm10, %v699_v45, 0.0  ;;  %v700_v48 = vsel %vm407_vm10, %v698_v46, 0.0 }
 0x533   :  { %704 = vadd.xlane.f32.xlu0 %v703_v47  ;;  %701 = vadd.xlane.f32.xlu1 %v700_v48 }
 0x5c0   :  { %v705_v29 = vpop.xlane.xlu0 %704  ;;  %v702_v49 = vpop.xlane.xlu1 %701 }
 0x5c1   :  { %v708_v50 = vmul.f32 0.03125, %v705_v29  ;;  %v707_v51 = vmul.f32 0.03125, %v702_v49 }
 0x5c3   :  { %v1103_v52 = vsub.f32 %v699_v45, %v708_v50  ;;  %v1105_v53 = vsub.f32 %v698_v46, %v707_v51 }
 0x5c5   :  { %v712_v34 = vmul.f32 %v1103_v52, %v1103_v52  ;;  %v711_v54 = vmul.f32 %v1105_v53, %v1105_v53 }
 0x5c7   :  { %v716_v55 = vsel %vm407_vm10, %v712_v34, 0.0  ;;  %v713_v56 = vsel %vm407_vm10, %v711_v54, 0.0 }
 0x5c8   :  { %717 = vadd.xlane.f32.xlu1 %v716_v55  ;;  %714 = vadd.xlane.f32.xlu0 %v713_v56 }
 0x5d9   :  { %380 = vrot.lane.b32.xlu1 %v377_v57, %s935_s3 }
 0x5dd   :  { %370 = vrot.lane.b32.xlu1 %v368_v58, %s936_s20 }
 0x5de   :  { %372 = vrot.lane.b32.xlu0 %v369_v59, %s936_s20 }
 0x5e1   :  { %378 = vrot.lane.b32.xlu1 %v376_v60, %s935_s3 }
 0x5e2   :  { %388 = vrot.lane.b32.xlu0 %v385_v61, %s937_s21 }
 0x5e6   :  { %386 = vrot.lane.b32.xlu0 %v384_v62, %s937_s21 }
 0x655   :  { %v715_v63 = vpop.xlane.xlu0 %714  ;;  %v718_v0 = vpop.xlane.xlu1 %717 }
 0x656   :  { %v720_v1 = vmul.f32 0.032258064, %v715_v63  ;;  %v721_v2 = vmul.f32 0.032258064, %v718_v0 }
 0x658   :  { %897 = vrsqrt.f32 %v720_v1  ;;  %vm724_vm11 = vcmp.eq.f32.partialorder %v720_v1, inf  ;;  %vm726_vm12 = vcmp.eq.f32.partialorder %v720_v1, 0.0  ;;  %vm731_vm13 = vcmp.eq.f32.partialorder %v721_v2, inf }
 0x659   :  { %899 = vrsqrt.f32 %v721_v2  ;;  %v373_v5 = vpop.permute.xlu0 %372  ;;  %v381_v6 = vpop.permute.xlu1 %380  ;;  %v734_v26 = vand.u32 2147483648, %v721_v2  ;;  %vm733_vm14 = vcmp.eq.f32.partialorder %v721_v2, 0.0 }
 0x65a   :  { %v394_v10 = vsel %vm392_vm6, %v1060_v9, %v373_v5  ;;  %v727_v9 = vand.u32 2147483648, %v720_v1 }
 0x65b   :  { %v397_v13 = vsel %vm395_vm7, %v394_v10, %v381_v6 }
 0x65d   :  { %v389_v11 = vpop.permute.xlu0 %388  ;;  %v371_v12 = vpop.permute.xlu1 %370 }
 0x65e   :  { %v400_v7 = vsel %vm398_vm8, %v397_v13, %v389_v11  ;;  %v393_v14 = vsel %vm392_vm6, %v1054_v3, %v371_v12 }
 0x65f   :  { %v403_v19 = vrot.slane %v400_v7, 7 }
 0x661   :  { %v387_v15 = vpop.permute.xlu0 %386  ;;  %v379_v16 = vpop.permute.xlu1 %378 }
 0x662   :  { %v898_v17 = vpop.eup %897  ;;  %v396_v20 = vsel %vm395_vm7, %v393_v14, %v379_v16 }
 0x663   :  { %v900_v21 = vpop.eup %899  ;;  %v723_v22 = vmul.f32 %v898_v17, %v720_v1  ;;  %v399_v4 = vsel %vm398_vm8, %v396_v20, %v387_v15 }
 0x664   :  { %v730_v23 = vmul.f32 %v900_v21, %v721_v2  ;;  %v405_v24 = vsel %vm404_vm9, %v403_v19, %v399_v4 }
 0x665   :  { %v725_v25 = vsel %vm724_vm11, %v720_v1, %v723_v22  ;;  %408 = vst.msk [vmem:[%s1157_s5] sm:$0x3] %vm407_vm10, %v405_v24  ;;  %s938_s5 = smov [#allocation2]  }
 0x666   :  { %v728_v3 = vsel %vm726_vm12, %v727_v9, %v725_v25  ;;  %v732_v27 = vsel %vm731_vm13, %v721_v2, %v730_v23  ;;  %s761_s24 = sshll.u32 %s938_s5, 4  ;;  %s762_s24 = int_to_ptr.vmem [resolvable:$true] %s761_s24 }
 0x667   :  { %v736_v28 = vadd.f32 0.001, %v728_v3  ;;  %v735_v30 = vsel %vm733_vm14, %v734_v26, %v732_v27  ;;  %s905_s25 = scalar_lea.vmem %s762_s24, 64  ;;  %p910_p1 = scmp.lt.s32.totalorder %s762_s24, %s762_s24 }
 0x668   :  { %v737_v31 = vadd.f32 0.001, %v735_v30  ;;  %p906_p0 = scmp.ne.s32.totalorder %s762_s24, %s905_s25  ;;  %p911_p2 = scmp.lt.s32.totalorder %s905_s25, %s905_s25 }
 0x669   :  { %901 = vrcp.f32 %v736_v28 }
 0x66a   :  { %903 = vrcp.f32 %v737_v31  ;;  %p912_p3 = por %p911_p2, %p910_p1 }
 0x66c   :  { %p913_p4 = pnand %p912_p3, %p906_p0 }
 0x673   :  { %v902_v36 = vpop.eup %901 }
 0x674   :  { %v904_v38 = vpop.eup %903  ;;  %v740_v40 = vmul.f32 %v902_v36, %v1105_v53 }
 0x675   :  { %v741_v41 = vmul.f32 %v904_v38, %v1103_v52 }
 0x676   :  { %v746_v42 = vmul.f32 %v745_v35, %v740_v40 }
 0x677   :  { %v747_v43 = vmul.f32 %v745_v35, %v741_v41 }
 0x678   :  { %v752_v44 = vadd.f32 %v751_v39, %v746_v42 }
 0x679   :  { %v753_v18 = vadd.f32 %v751_v39, %v747_v43 }
 0x67a   :  { %754 = vst.msk [vmem:[#allocation2] sm:$0x3] %vm407_vm10, %v752_v44 }
 0x67b   :  { %755 = vst.msk [vmem:[#allocation2 + $0x2] sm:$0x3] %vm407_vm10, %v753_v18 }
 0x67c   :  { %916 = shalt.err (!%p913_p4)
}
 0x67d   :  { %s917_s27 = scalar_lea.hbm %s1156_s4, 64 }
 0x67e   :  { %p918_p5 = scmp.ne.s32.totalorder %s1156_s4, %s917_s27  ;;  %p921_p6 = scmp.lt.u32.totalorder %s917_s27, %s1156_s4 }
 0x680   :  { %p923_p7 = pnand %p921_p6, %p918_p5 }
 0x682   :  { %926 = shalt.err (!%p923_p7)
}
 0x683   :  { %s939_s7 = smov 32   ;;  %s940_s8 = smov 2  }
 0x684   :  { %767 = dma.vmem_to_hbm [thread:$0]  %s762_s24, 64, %s1156_s4, [#allocation3], %s939_s7, %s939_s7, %s940_s8  }
 0x685   :  { %927 = dma.done.wait [#allocation3], 64  }
 0x686   :  { %928 = vsyncadd [#allocation3], 4294967232 }
 0x687   :  { %775 = vsyncpa [#allocation3], 1 }

</bundles_post_ra>
